<compile_context>
chip_gen: v6e
topology: v6e:2x2x1
jax: 0.10.0
libtpu: 0.0.40
codegen_flags: <defaults>
</compile_context>

<pallas_src>
import math
from functools import partial

import jax
import jax.numpy as jnp
from jax.experimental import pallas as pl
from jax.experimental.pallas import tpu as pltpu


# ---------------------------------------------------------------------------
# Fused Pallas kernel: all conv layers + bias + LeakyReLU for one batch item.
# ---------------------------------------------------------------------------
def _fused_encoder_kernel(*refs, layer_specs, neg_slope):
    # refs = (x_ref, w0_ref, b0_ref, ..., w{n-1}_ref, b{n-1}_ref, o_ref)
    # x_ref : (C_in0, L0)          NCL layout, batch dim squeezed by BlockSpec
    # wI_ref: (C_outI, K*C_inI)    im2col-flattened Conv1d weight
    # bI_ref: (C_outI, 1)
    # o_ref : (C_last, L_last)
    n = len(layer_specs)
    x_ref = refs[0]
    o_ref = refs[1 + 2 * n]

    x = x_ref[...].astype(jnp.float32)                    # (C_in, L_cols)
    for li, spec in enumerate(layer_specs):
        w_ref = refs[1 + 2 * li]
        b_ref = refs[2 + 2 * li]
        k, stride, pad = spec["k"], spec["stride"], spec["pad"]
        shift, l_cols, l_out = spec["shift"], spec["l_cols"], spec["l_out"]

        # One-hot selection matrices implement both the strided tap gather and
        # all zero padding: any out-of-range source index selects nothing and
        # yields an exact zero column.  iota+compare is VPU work; the gather
        # itself runs on the MXU.
        row = jax.lax.broadcasted_iota(jnp.int32, (l_cols, l_out), 0)  # src i
        col = jax.lax.broadcasted_iota(jnp.int32, (l_cols, l_out), 1)  # dst j
        taps = []
        for dk in range(k):                                # static, unrolled
            sel = (row == stride * col + (dk - pad - shift))
            taps.append(jnp.dot(x, sel.astype(jnp.float32),
                                preferred_element_type=jnp.float32))
        xs2 = jnp.concatenate(taps, axis=0)                # im2col (K*C_in, L_out)

        y = jnp.dot(w_ref[...], xs2, preferred_element_type=jnp.float32)
        y = y + b_ref[...]                                 # (C_out, 1) broadcast
        # TODO(synk): nn.Dropout(p=0.5) between conv and LeakyReLU is identity
        # in eval mode; training-mode stochastic dropout is not implemented.
        if spec["apply_act"]:
            y = jnp.where(y >= 0.0, y, neg_slope * y)      # LeakyReLU(0.01)
        x = y

    o_ref[...] = x.astype(o_ref.dtype)


# ---------------------------------------------------------------------------
# Parameter construction mirroring ConvolutionalEncoder.__init__
# ---------------------------------------------------------------------------
def build_encoder_params(key, channel_length, filter_size=3, n_layers=4,
                         convolutions_per_layer=1, n_filters_index=2,
                         final_number_filters=5, down_sampling_factor=2):
    n_filters = final_number_filters * n_filters_index ** (n_layers - 1)
    layers = []
    in_ch = channel_length
    for _layer in range(n_layers):
        out_ch = n_filters
        for c in range(convolutions_per_layer):
            last = (c == convolutions_per_layer - 1)
            stride = down_sampling_factor if last else 1
            key, kw, kb = jax.random.split(key, 3)
            bound = 1.0 / math.sqrt(in_ch * filter_size)   # PyTorch-style init
            w = jax.random.uniform(kw, (out_ch, in_ch, filter_size),
                                   jnp.float32, -bound, bound)
            b = jax.random.uniform(kb, (out_ch,), jnp.float32, -bound, bound)
            # LeakyReLU is applied once per layer, after that layer's last conv
            layers.append(dict(w=w, b=b, stride=stride, apply_act=last))
            in_ch = out_ch
        n_filters = n_filters // n_filters_index
    return layers


def compute_padding(length, down_sampling_factor, n_layers):
    reducing_factor = down_sampling_factor ** n_layers
    if length % reducing_factor != 0:
        length_after_encoding = length // reducing_factor
        new_length = (length_after_encoding + 1) * reducing_factor
        diff = new_length - length
        first = diff // 2
        return (first, diff - first)
    return (0, 0)


# ---------------------------------------------------------------------------
# Wrapper: single fused pallas_call over the batch dimension.
# ---------------------------------------------------------------------------
def convolutional_encoder_forward(x_ncl, params, *, down_sampling_factor=2,
                                  n_layers=4):
    """Forward pass of ConvolutionalEncoder. Returns (encoded_NCL, padding)."""
    n, c0, length = x_ncl.shape
    padding = compute_padding(length, down_sampling_factor, n_layers)

    layer_specs = []
    inputs = [x_ncl]
    in_specs = [pl.BlockSpec((None, c0, length), lambda i: (i, 0, 0))]

    l_cols = length                                  # physical lane width of x
    l_logical = length + padding[0] + padding[1]     # length "seen" by layer 0
    shift = padding[0]                               # encoder left pad (layer 0)
    for layer in params:
        w = layer["w"]                               # (C_out, C_in, K) PyTorch layout
        c_out, c_in, k = w.shape
        pad = k // 2
        stride = layer["stride"]
        l_out = (l_logical + 2 * pad - k) // stride + 1   # PyTorch Conv1d formula
        layer_specs.append(dict(k=k, stride=stride, pad=pad, shift=shift,
                                l_cols=l_cols, l_out=l_out,
                                apply_act=layer["apply_act"]))
        # (C_out, C_in, K) -> (C_out, K*C_in) matching xs2's (dk-major, c-minor) rows
        w_mat = jnp.transpose(w, (0, 2, 1)).reshape(c_out, k * c_in)
        b_col = layer["b"].reshape(c_out, 1)
        inputs += [w_mat, b_col]
        in_specs += [pl.BlockSpec((c_out, k * c_in), lambda i: (0, 0)),
                     pl.BlockSpec((c_out, 1), lambda i: (0, 0))]
        l_cols = l_out
        l_logical = l_out
        shift = 0

    c_last, l_last = params[-1]["w"].shape[0], l_cols
    kernel = partial(_fused_encoder_kernel, layer_specs=tuple(layer_specs),
                     neg_slope=0.01)
    out = pl.pallas_call(
        kernel,
        out_shape=jax.ShapeDtypeStruct((n, c_last, l_last), jnp.float32),
        grid=(n,),
        in_specs=in_specs,
        out_specs=pl.BlockSpec((None, c_last, l_last), lambda i: (i, 0, 0)),
        compiler_params=pltpu.CompilerParams(
            dimension_semantics=("parallel",)),
    )(*inputs)
    return out, padding


# ---------------------------------------------------------------------------
# Pure-JAX reference (lax.conv) used only to validate the Pallas kernel.
# ---------------------------------------------------------------------------
def _reference_forward(x_ncl, params, *, down_sampling_factor=2, n_layers=4):
    padding = compute_padding(x_ncl.shape[2], down_sampling_factor, n_layers)
    x = jnp.pad(x_ncl, ((0, 0), (0, 0), (padding[0], padding[1])))
    for layer in params:
        k = layer["w"].shape[-1]
        pad = k // 2
        x = jax.lax.conv_general_dilated(
            x, layer["w"], window_strides=(layer["stride"],),
            padding=((pad, pad),), dimension_numbers=("NCH", "OIH", "NCH"))
        x = x + layer["b"][None, :, None]
        if layer["apply_act"]:
            x = jnp.where(x >= 0.0, x, 0.01 * x)
    return x, padding


if __name__ == "__main__":
    key = jax.random.PRNGKey(0)
    key, kx = jax.random.split(key)

    batch, channels, length = 2, 4, 50   # length not divisible by 2**4 -> pads
    x = jax.random.normal(kx, (batch, channels, length), jnp.float32)
    params = build_encoder_params(key, channel_length=channels)

    out, padding = convolutional_encoder_forward(x, params)
    out = jax.block_until_ready(out)

    ref, ref_pad = _reference_forward(x, params)
    assert padding == ref_pad == (7, 7), padding
    expected_len = (length + padding[0] + padding[1]) // (2 ** 4)
    assert out.shape == (batch, 5, expected_len), out.shape
    assert jnp.allclose(out, ref, atol=1e-2, rtol=1e-2), \
        float(jnp.max(jnp.abs(out - ref)))

    print("KERNEL_OK")
</pallas_src>

<mosaic_0001>
module attributes {stable_mosaic.version = 11 : i64} {
  func.func @_fused_encoder_kernel(%arg0: i32, %arg1: memref<1x4x50xf32, #tpu.memory_space<vmem>>, %arg2: memref<40x12xf32, #tpu.memory_space<vmem>>, %arg3: memref<40x1xf32, #tpu.memory_space<vmem>>, %arg4: memref<20x120xf32, #tpu.memory_space<vmem>>, %arg5: memref<20x1xf32, #tpu.memory_space<vmem>>, %arg6: memref<10x60xf32, #tpu.memory_space<vmem>>, %arg7: memref<10x1xf32, #tpu.memory_space<vmem>>, %arg8: memref<5x30xf32, #tpu.memory_space<vmem>>, %arg9: memref<5x1xf32, #tpu.memory_space<vmem>>, %arg10: memref<1x5x4xf32, #tpu.memory_space<vmem>>) attributes {dimension_semantics = [#tpu.dimension_semantics<parallel>], iteration_bounds = array<i64: 2>, scalar_prefetch = 0 : i64, scratch_operands = 0 : i64, tpu.core_type = #tpu.core_type<tc>, window_params = [{transform_indices = @transform_0, window_bounds = array<i64: 1, 4, 50>}, {pipeline_mode = #tpu.pipeline_mode<synchronous>, transform_indices = @transform_1, window_bounds = array<i64: 40, 12>}, {pipeline_mode = #tpu.pipeline_mode<synchronous>, transform_indices = @transform_2, window_bounds = array<i64: 40, 1>}, {pipeline_mode = #tpu.pipeline_mode<synchronous>, transform_indices = @transform_3, window_bounds = array<i64: 20, 120>}, {pipeline_mode = #tpu.pipeline_mode<synchronous>, transform_indices = @transform_4, window_bounds = array<i64: 20, 1>}, {pipeline_mode = #tpu.pipeline_mode<synchronous>, transform_indices = @transform_5, window_bounds = array<i64: 10, 60>}, {pipeline_mode = #tpu.pipeline_mode<synchronous>, transform_indices = @transform_6, window_bounds = array<i64: 10, 1>}, {pipeline_mode = #tpu.pipeline_mode<synchronous>, transform_indices = @transform_7, window_bounds = array<i64: 5, 30>}, {pipeline_mode = #tpu.pipeline_mode<synchronous>, transform_indices = @transform_8, window_bounds = array<i64: 5, 1>}, {transform_indices = @transform_9, window_bounds = array<i64: 1, 5, 4>}]} {
    %c0 = arith.constant 0 : index
    %c0_0 = arith.constant 0 : index
    %c0_1 = arith.constant 0 : index
    %0 = vector.load %arg1[%c0, %c0_0, %c0_1] : memref<1x4x50xf32, #tpu.memory_space<vmem>>, vector<1x4x50xf32>
    %1 = vector.shape_cast %0 : vector<1x4x50xf32> to vector<4x50xf32>
    %2 = tpu.iota {dimensions = array<i32: 0>} : vector<50x32xi32>
    %3 = tpu.iota {dimensions = array<i32: 1>} : vector<50x32xi32>
    %c2_i32 = arith.constant 2 : i32
    %4 = vector.broadcast %c2_i32 : i32 to vector<50x32xi32>
    %5 = arith.muli %4, %3 : vector<50x32xi32>
    %c-8_i32 = arith.constant -8 : i32
    %6 = vector.broadcast %c-8_i32 : i32 to vector<50x32xi32>
    %7 = arith.addi %5, %6 : vector<50x32xi32>
    %8 = arith.cmpi eq, %2, %7 : vector<50x32xi32>
    %9 = arith.extui %8 : vector<50x32xi1> to vector<50x32xi32>
    %10 = arith.sitofp %9 : vector<50x32xi32> to vector<50x32xf32>
    %cst = arith.constant dense<0.000000e+00> : vector<4x32xf32>
    %11 = tpu.matmul %1, %10, %cst {dimension_numbers = #tpu.dot_dimension_numbers<[1], [0], [0], [1], [0, 0, 1, 1], [], []>} : vector<4x50xf32>, vector<50x32xf32>, vector<4x32xf32> -> vector<4x32xf32>
    %c2_i32_2 = arith.constant 2 : i32
    %12 = vector.broadcast %c2_i32_2 : i32 to vector<50x32xi32>
    %13 = arith.muli %12, %3 : vector<50x32xi32>
    %c-7_i32 = arith.constant -7 : i32
    %14 = vector.broadcast %c-7_i32 : i32 to vector<50x32xi32>
    %15 = arith.addi %13, %14 : vector<50x32xi32>
    %16 = arith.cmpi eq, %2, %15 : vector<50x32xi32>
    %17 = arith.extui %16 : vector<50x32xi1> to vector<50x32xi32>
    %18 = arith.sitofp %17 : vector<50x32xi32> to vector<50x32xf32>
    %cst_3 = arith.constant dense<0.000000e+00> : vector<4x32xf32>
    %19 = tpu.matmul %1, %18, %cst_3 {dimension_numbers = #tpu.dot_dimension_numbers<[1], [0], [0], [1], [0, 0, 1, 1], [], []>} : vector<4x50xf32>, vector<50x32xf32>, vector<4x32xf32> -> vector<4x32xf32>
    %c2_i32_4 = arith.constant 2 : i32
    %20 = vector.broadcast %c2_i32_4 : i32 to vector<50x32xi32>
    %21 = arith.muli %20, %3 : vector<50x32xi32>
    %c-6_i32 = arith.constant -6 : i32
    %22 = vector.broadcast %c-6_i32 : i32 to vector<50x32xi32>
    %23 = arith.addi %21, %22 : vector<50x32xi32>
    %24 = arith.cmpi eq, %2, %23 : vector<50x32xi32>
    %25 = arith.extui %24 : vector<50x32xi1> to vector<50x32xi32>
    %26 = arith.sitofp %25 : vector<50x32xi32> to vector<50x32xf32>
    %cst_5 = arith.constant dense<0.000000e+00> : vector<4x32xf32>
    %27 = tpu.matmul %1, %26, %cst_5 {dimension_numbers = #tpu.dot_dimension_numbers<[1], [0], [0], [1], [0, 0, 1, 1], [], []>} : vector<4x50xf32>, vector<50x32xf32>, vector<4x32xf32> -> vector<4x32xf32>
    %28 = tpu.concatenate %11, %19, %27 in 0 : vector<4x32xf32>, vector<4x32xf32>, vector<4x32xf32> -> vector<12x32xf32>
    %c0_6 = arith.constant 0 : index
    %c0_7 = arith.constant 0 : index
    %29 = vector.load %arg2[%c0_6, %c0_7] : memref<40x12xf32, #tpu.memory_space<vmem>>, vector<40x12xf32>
    %cst_8 = arith.constant dense<0.000000e+00> : vector<40x32xf32>
    %30 = tpu.matmul %29, %28, %cst_8 {dimension_numbers = #tpu.dot_dimension_numbers<[1], [0], [0], [1], [0, 0, 1, 1], [], []>} : vector<40x12xf32>, vector<12x32xf32>, vector<40x32xf32> -> vector<40x32xf32>
    %c0_9 = arith.constant 0 : index
    %c0_10 = arith.constant 0 : index
    %31 = vector.load %arg3[%c0_9, %c0_10] : memref<40x1xf32, #tpu.memory_space<vmem>>, vector<40x1xf32>
    %32 = vector.broadcast %31 : vector<40x1xf32> to vector<40x32xf32>
    %33 = arith.addf %30, %32 : vector<40x32xf32>
    %cst_11 = arith.constant 0.000000e+00 : f32
    %34 = vector.broadcast %cst_11 : f32 to vector<40x32xf32>
    %35 = arith.cmpf oge, %33, %34 : vector<40x32xf32>
    %cst_12 = arith.constant 0.00999999977 : f32
    %36 = vector.broadcast %cst_12 : f32 to vector<40x32xf32>
    %37 = arith.mulf %36, %33 : vector<40x32xf32>
    %38 = arith.select %35, %33, %37 : vector<40x32xi1>, vector<40x32xf32>
    %39 = tpu.iota {dimensions = array<i32: 0>} : vector<32x16xi32>
    %40 = tpu.iota {dimensions = array<i32: 1>} : vector<32x16xi32>
    %c2_i32_13 = arith.constant 2 : i32
    %41 = vector.broadcast %c2_i32_13 : i32 to vector<32x16xi32>
    %42 = arith.muli %41, %40 : vector<32x16xi32>
    %c-1_i32 = arith.constant -1 : i32
    %43 = vector.broadcast %c-1_i32 : i32 to vector<32x16xi32>
    %44 = arith.addi %42, %43 : vector<32x16xi32>
    %45 = arith.cmpi eq, %39, %44 : vector<32x16xi32>
    %46 = arith.extui %45 : vector<32x16xi1> to vector<32x16xi32>
    %47 = arith.sitofp %46 : vector<32x16xi32> to vector<32x16xf32>
    %cst_14 = arith.constant dense<0.000000e+00> : vector<40x16xf32>
    %48 = tpu.matmul %38, %47, %cst_14 {dimension_numbers = #tpu.dot_dimension_numbers<[1], [0], [0], [1], [0, 0, 1, 1], [], []>} : vector<40x32xf32>, vector<32x16xf32>, vector<40x16xf32> -> vector<40x16xf32>
    %c2_i32_15 = arith.constant 2 : i32
    %49 = vector.broadcast %c2_i32_15 : i32 to vector<32x16xi32>
    %50 = arith.muli %49, %40 : vector<32x16xi32>
    %c0_i32 = arith.constant 0 : i32
    %51 = vector.broadcast %c0_i32 : i32 to vector<32x16xi32>
    %52 = arith.addi %50, %51 : vector<32x16xi32>
    %53 = arith.cmpi eq, %39, %52 : vector<32x16xi32>
    %54 = arith.extui %53 : vector<32x16xi1> to vector<32x16xi32>
    %55 = arith.sitofp %54 : vector<32x16xi32> to vector<32x16xf32>
    %cst_16 = arith.constant dense<0.000000e+00> : vector<40x16xf32>
    %56 = tpu.matmul %38, %55, %cst_16 {dimension_numbers = #tpu.dot_dimension_numbers<[1], [0], [0], [1], [0, 0, 1, 1], [], []>} : vector<40x32xf32>, vector<32x16xf32>, vector<40x16xf32> -> vector<40x16xf32>
    %c2_i32_17 = arith.constant 2 : i32
    %57 = vector.broadcast %c2_i32_17 : i32 to vector<32x16xi32>
    %58 = arith.muli %57, %40 : vector<32x16xi32>
    %c1_i32 = arith.constant 1 : i32
    %59 = vector.broadcast %c1_i32 : i32 to vector<32x16xi32>
    %60 = arith.addi %58, %59 : vector<32x16xi32>
    %61 = arith.cmpi eq, %39, %60 : vector<32x16xi32>
    %62 = arith.extui %61 : vector<32x16xi1> to vector<32x16xi32>
    %63 = arith.sitofp %62 : vector<32x16xi32> to vector<32x16xf32>
    %cst_18 = arith.constant dense<0.000000e+00> : vector<40x16xf32>
    %64 = tpu.matmul %38, %63, %cst_18 {dimension_numbers = #tpu.dot_dimension_numbers<[1], [0], [0], [1], [0, 0, 1, 1], [], []>} : vector<40x32xf32>, vector<32x16xf32>, vector<40x16xf32> -> vector<40x16xf32>
    %65 = tpu.concatenate %48, %56, %64 in 0 : vector<40x16xf32>, vector<40x16xf32>, vector<40x16xf32> -> vector<120x16xf32>
    %c0_19 = arith.constant 0 : index
    %c0_20 = arith.constant 0 : index
    %66 = vector.load %arg4[%c0_19, %c0_20] : memref<20x120xf32, #tpu.memory_space<vmem>>, vector<20x120xf32>
    %cst_21 = arith.constant dense<0.000000e+00> : vector<20x16xf32>
    %67 = tpu.matmul %66, %65, %cst_21 {dimension_numbers = #tpu.dot_dimension_numbers<[1], [0], [0], [1], [0, 0, 1, 1], [], []>} : vector<20x120xf32>, vector<120x16xf32>, vector<20x16xf32> -> vector<20x16xf32>
    %c0_22 = arith.constant 0 : index
    %c0_23 = arith.constant 0 : index
    %68 = vector.load %arg5[%c0_22, %c0_23] : memref<20x1xf32, #tpu.memory_space<vmem>>, vector<20x1xf32>
    %69 = vector.broadcast %68 : vector<20x1xf32> to vector<20x16xf32>
    %70 = arith.addf %67, %69 : vector<20x16xf32>
    %cst_24 = arith.constant 0.000000e+00 : f32
    %71 = vector.broadcast %cst_24 : f32 to vector<20x16xf32>
    %72 = arith.cmpf oge, %70, %71 : vector<20x16xf32>
    %cst_25 = arith.constant 0.00999999977 : f32
    %73 = vector.broadcast %cst_25 : f32 to vector<20x16xf32>
    %74 = arith.mulf %73, %70 : vector<20x16xf32>
    %75 = arith.select %72, %70, %74 : vector<20x16xi1>, vector<20x16xf32>
    %76 = tpu.iota {dimensions = array<i32: 0>} : vector<16x8xi32>
    %77 = tpu.iota {dimensions = array<i32: 1>} : vector<16x8xi32>
    %c2_i32_26 = arith.constant 2 : i32
    %78 = vector.broadcast %c2_i32_26 : i32 to vector<16x8xi32>
    %79 = arith.muli %78, %77 : vector<16x8xi32>
    %c-1_i32_27 = arith.constant -1 : i32
    %80 = vector.broadcast %c-1_i32_27 : i32 to vector<16x8xi32>
    %81 = arith.addi %79, %80 : vector<16x8xi32>
    %82 = arith.cmpi eq, %76, %81 : vector<16x8xi32>
    %83 = arith.extui %82 : vector<16x8xi1> to vector<16x8xi32>
    %84 = arith.sitofp %83 : vector<16x8xi32> to vector<16x8xf32>
    %cst_28 = arith.constant dense<0.000000e+00> : vector<20x8xf32>
    %85 = tpu.matmul %75, %84, %cst_28 {dimension_numbers = #tpu.dot_dimension_numbers<[1], [0], [0], [1], [0, 0, 1, 1], [], []>} : vector<20x16xf32>, vector<16x8xf32>, vector<20x8xf32> -> vector<20x8xf32>
    %c2_i32_29 = arith.constant 2 : i32
    %86 = vector.broadcast %c2_i32_29 : i32 to vector<16x8xi32>
    %87 = arith.muli %86, %77 : vector<16x8xi32>
    %c0_i32_30 = arith.constant 0 : i32
    %88 = vector.broadcast %c0_i32_30 : i32 to vector<16x8xi32>
    %89 = arith.addi %87, %88 : vector<16x8xi32>
    %90 = arith.cmpi eq, %76, %89 : vector<16x8xi32>
    %91 = arith.extui %90 : vector<16x8xi1> to vector<16x8xi32>
    %92 = arith.sitofp %91 : vector<16x8xi32> to vector<16x8xf32>
    %cst_31 = arith.constant dense<0.000000e+00> : vector<20x8xf32>
    %93 = tpu.matmul %75, %92, %cst_31 {dimension_numbers = #tpu.dot_dimension_numbers<[1], [0], [0], [1], [0, 0, 1, 1], [], []>} : vector<20x16xf32>, vector<16x8xf32>, vector<20x8xf32> -> vector<20x8xf32>
    %c2_i32_32 = arith.constant 2 : i32
    %94 = vector.broadcast %c2_i32_32 : i32 to vector<16x8xi32>
    %95 = arith.muli %94, %77 : vector<16x8xi32>
    %c1_i32_33 = arith.constant 1 : i32
    %96 = vector.broadcast %c1_i32_33 : i32 to vector<16x8xi32>
    %97 = arith.addi %95, %96 : vector<16x8xi32>
    %98 = arith.cmpi eq, %76, %97 : vector<16x8xi32>
    %99 = arith.extui %98 : vector<16x8xi1> to vector<16x8xi32>
    %100 = arith.sitofp %99 : vector<16x8xi32> to vector<16x8xf32>
    %cst_34 = arith.constant dense<0.000000e+00> : vector<20x8xf32>
    %101 = tpu.matmul %75, %100, %cst_34 {dimension_numbers = #tpu.dot_dimension_numbers<[1], [0], [0], [1], [0, 0, 1, 1], [], []>} : vector<20x16xf32>, vector<16x8xf32>, vector<20x8xf32> -> vector<20x8xf32>
    %102 = tpu.concatenate %85, %93, %101 in 0 : vector<20x8xf32>, vector<20x8xf32>, vector<20x8xf32> -> vector<60x8xf32>
    %c0_35 = arith.constant 0 : index
    %c0_36 = arith.constant 0 : index
    %103 = vector.load %arg6[%c0_35, %c0_36] : memref<10x60xf32, #tpu.memory_space<vmem>>, vector<10x60xf32>
    %cst_37 = arith.constant dense<0.000000e+00> : vector<10x8xf32>
    %104 = tpu.matmul %103, %102, %cst_37 {dimension_numbers = #tpu.dot_dimension_numbers<[1], [0], [0], [1], [0, 0, 1, 1], [], []>} : vector<10x60xf32>, vector<60x8xf32>, vector<10x8xf32> -> vector<10x8xf32>
    %c0_38 = arith.constant 0 : index
    %c0_39 = arith.constant 0 : index
    %105 = vector.load %arg7[%c0_38, %c0_39] : memref<10x1xf32, #tpu.memory_space<vmem>>, vector<10x1xf32>
    %106 = vector.broadcast %105 : vector<10x1xf32> to vector<10x8xf32>
    %107 = arith.addf %104, %106 : vector<10x8xf32>
    %cst_40 = arith.constant 0.000000e+00 : f32
    %108 = vector.broadcast %cst_40 : f32 to vector<10x8xf32>
    %109 = arith.cmpf oge, %107, %108 : vector<10x8xf32>
    %cst_41 = arith.constant 0.00999999977 : f32
    %110 = vector.broadcast %cst_41 : f32 to vector<10x8xf32>
    %111 = arith.mulf %110, %107 : vector<10x8xf32>
    %112 = arith.select %109, %107, %111 : vector<10x8xi1>, vector<10x8xf32>
    %113 = tpu.iota {dimensions = array<i32: 0>} : vector<8x4xi32>
    %114 = tpu.iota {dimensions = array<i32: 1>} : vector<8x4xi32>
    %c2_i32_42 = arith.constant 2 : i32
    %115 = vector.broadcast %c2_i32_42 : i32 to vector<8x4xi32>
    %116 = arith.muli %115, %114 : vector<8x4xi32>
    %c-1_i32_43 = arith.constant -1 : i32
    %117 = vector.broadcast %c-1_i32_43 : i32 to vector<8x4xi32>
    %118 = arith.addi %116, %117 : vector<8x4xi32>
    %119 = arith.cmpi eq, %113, %118 : vector<8x4xi32>
    %120 = arith.extui %119 : vector<8x4xi1> to vector<8x4xi32>
    %121 = arith.sitofp %120 : vector<8x4xi32> to vector<8x4xf32>
    %cst_44 = arith.constant dense<0.000000e+00> : vector<10x4xf32>
    %122 = tpu.matmul %112, %121, %cst_44 {dimension_numbers = #tpu.dot_dimension_numbers<[1], [0], [0], [1], [0, 0, 1, 1], [], []>} : vector<10x8xf32>, vector<8x4xf32>, vector<10x4xf32> -> vector<10x4xf32>
    %c2_i32_45 = arith.constant 2 : i32
    %123 = vector.broadcast %c2_i32_45 : i32 to vector<8x4xi32>
    %124 = arith.muli %123, %114 : vector<8x4xi32>
    %c0_i32_46 = arith.constant 0 : i32
    %125 = vector.broadcast %c0_i32_46 : i32 to vector<8x4xi32>
    %126 = arith.addi %124, %125 : vector<8x4xi32>
    %127 = arith.cmpi eq, %113, %126 : vector<8x4xi32>
    %128 = arith.extui %127 : vector<8x4xi1> to vector<8x4xi32>
    %129 = arith.sitofp %128 : vector<8x4xi32> to vector<8x4xf32>
    %cst_47 = arith.constant dense<0.000000e+00> : vector<10x4xf32>
    %130 = tpu.matmul %112, %129, %cst_47 {dimension_numbers = #tpu.dot_dimension_numbers<[1], [0], [0], [1], [0, 0, 1, 1], [], []>} : vector<10x8xf32>, vector<8x4xf32>, vector<10x4xf32> -> vector<10x4xf32>
    %c2_i32_48 = arith.constant 2 : i32
    %131 = vector.broadcast %c2_i32_48 : i32 to vector<8x4xi32>
    %132 = arith.muli %131, %114 : vector<8x4xi32>
    %c1_i32_49 = arith.constant 1 : i32
    %133 = vector.broadcast %c1_i32_49 : i32 to vector<8x4xi32>
    %134 = arith.addi %132, %133 : vector<8x4xi32>
    %135 = arith.cmpi eq, %113, %134 : vector<8x4xi32>
    %136 = arith.extui %135 : vector<8x4xi1> to vector<8x4xi32>
    %137 = arith.sitofp %136 : vector<8x4xi32> to vector<8x4xf32>
    %cst_50 = arith.constant dense<0.000000e+00> : vector<10x4xf32>
    %138 = tpu.matmul %112, %137, %cst_50 {dimension_numbers = #tpu.dot_dimension_numbers<[1], [0], [0], [1], [0, 0, 1, 1], [], []>} : vector<10x8xf32>, vector<8x4xf32>, vector<10x4xf32> -> vector<10x4xf32>
    %139 = tpu.concatenate %122, %130, %138 in 0 : vector<10x4xf32>, vector<10x4xf32>, vector<10x4xf32> -> vector<30x4xf32>
    %c0_51 = arith.constant 0 : index
    %c0_52 = arith.constant 0 : index
    %140 = vector.load %arg8[%c0_51, %c0_52] : memref<5x30xf32, #tpu.memory_space<vmem>>, vector<5x30xf32>
    %cst_53 = arith.constant dense<0.000000e+00> : vector<5x4xf32>
    %141 = tpu.matmul %140, %139, %cst_53 {dimension_numbers = #tpu.dot_dimension_numbers<[1], [0], [0], [1], [0, 0, 1, 1], [], []>} : vector<5x30xf32>, vector<30x4xf32>, vector<5x4xf32> -> vector<5x4xf32>
    %c0_54 = arith.constant 0 : index
    %c0_55 = arith.constant 0 : index
    %142 = vector.load %arg9[%c0_54, %c0_55] : memref<5x1xf32, #tpu.memory_space<vmem>>, vector<5x1xf32>
    %143 = vector.broadcast %142 : vector<5x1xf32> to vector<5x4xf32>
    %144 = arith.addf %141, %143 : vector<5x4xf32>
    %cst_56 = arith.constant 0.000000e+00 : f32
    %145 = vector.broadcast %cst_56 : f32 to vector<5x4xf32>
    %146 = arith.cmpf oge, %144, %145 : vector<5x4xf32>
    %cst_57 = arith.constant 0.00999999977 : f32
    %147 = vector.broadcast %cst_57 : f32 to vector<5x4xf32>
    %148 = arith.mulf %147, %144 : vector<5x4xf32>
    %149 = arith.select %146, %144, %148 : vector<5x4xi1>, vector<5x4xf32>
    %c0_58 = arith.constant 0 : index
    %c0_59 = arith.constant 0 : index
    %c0_60 = arith.constant 0 : index
    %150 = vector.load %arg10[%c0_58, %c0_59, %c0_60] : memref<1x5x4xf32, #tpu.memory_space<vmem>>, vector<1x5x4xf32>
    %151 = vector.shape_cast %150 : vector<1x5x4xf32> to vector<5x4xf32>
    %152 = vector.shape_cast %149 : vector<5x4xf32> to vector<1x5x4xf32>
    tpu.vector_store %arg10[%c0_58, %c0_59, %c0_60], %152 {strides = array<i32>} : memref<1x5x4xf32, #tpu.memory_space<vmem>>, vector<1x5x4xf32>,
    return
  }
  func.func @transform_0(%arg0: i32) -> (i32, i32, i32) {
    %c0_i32 = arith.constant 0 : i32
    %c0_i32_0 = arith.constant 0 : i32
    %c0_i32_1 = arith.constant 0 : i32
    return %arg0, %c0_i32, %c0_i32_0 : i32, i32, i32
  }
  func.func @transform_1(%arg0: i32) -> (i32, i32) {
    %c0_i32 = arith.constant 0 : i32
    %c0_i32_0 = arith.constant 0 : i32
    %c0_i32_1 = arith.constant 0 : i32
    return %c0_i32, %c0_i32_0 : i32, i32
  }
  func.func @transform_2(%arg0: i32) -> (i32, i32) {
    %c0_i32 = arith.constant 0 : i32
    %c0_i32_0 = arith.constant 0 : i32
    %c0_i32_1 = arith.constant 0 : i32
    return %c0_i32, %c0_i32_0 : i32, i32
  }
  func.func @transform_3(%arg0: i32) -> (i32, i32) {
    %c0_i32 = arith.constant 0 : i32
    %c0_i32_0 = arith.constant 0 : i32
    %c0_i32_1 = arith.constant 0 : i32
    return %c0_i32, %c0_i32_0 : i32, i32
  }
  func.func @transform_4(%arg0: i32) -> (i32, i32) {
    %c0_i32 = arith.constant 0 : i32
    %c0_i32_0 = arith.constant 0 : i32
    %c0_i32_1 = arith.constant 0 : i32
    return %c0_i32, %c0_i32_0 : i32, i32
  }
  func.func @transform_5(%arg0: i32) -> (i32, i32) {
    %c0_i32 = arith.constant 0 : i32
    %c0_i32_0 = arith.constant 0 : i32
    %c0_i32_1 = arith.constant 0 : i32
    return %c0_i32, %c0_i32_0 : i32, i32
  }
  func.func @transform_6(%arg0: i32) -> (i32, i32) {
    %c0_i32 = arith.constant 0 : i32
    %c0_i32_0 = arith.constant 0 : i32
    %c0_i32_1 = arith.constant 0 : i32
    return %c0_i32, %c0_i32_0 : i32, i32
  }
  func.func @transform_7(%arg0: i32) -> (i32, i32) {
    %c0_i32 = arith.constant 0 : i32
    %c0_i32_0 = arith.constant 0 : i32
    %c0_i32_1 = arith.constant 0 : i32
    return %c0_i32, %c0_i32_0 : i32, i32
  }
  func.func @transform_8(%arg0: i32) -> (i32, i32) {
    %c0_i32 = arith.constant 0 : i32
    %c0_i32_0 = arith.constant 0 : i32
    %c0_i32_1 = arith.constant 0 : i32
    return %c0_i32, %c0_i32_0 : i32, i32
  }
  func.func @transform_9(%arg0: i32) -> (i32, i32, i32) {
    %c0_i32 = arith.constant 0 : i32
    %c0_i32_0 = arith.constant 0 : i32
    %c0_i32_1 = arith.constant 0 : i32
    return %arg0, %c0_i32, %c0_i32_0 : i32, i32, i32
  }
}

</mosaic_0001>

<bundles_post_ra>
// kernel: tpu_custom_call.1
= control target key start
LH: loop header
LB: loop body
LE: loop exit
PB: predicated region body
PF: predicated region fallthrough
CT: control target
= control target key end

     0   :  { %s2578_s30 = smov 0   ;;  %s3019_s0 = inlined_call_operand.vmem [shape: f32[2,4,50], index: 0, kind: input, shape index: {}]   ;;  %s3020_s1 = inlined_call_operand.vmem [shape: f32[40,12], index: 1, kind: input, shape index: {}]   ;;  %s3021_s2 = inlined_call_operand.vmem [shape: f32[40,1], index: 2, kind: input, shape index: {}]   ;;  %s3022_s3 = inlined_call_operand.vmem [shape: f32[20,120], index: 3, kind: input, shape index: {}]   ;;  %s3023_s4 = inlined_call_operand.vmem [shape: f32[20,1], index: 4, kind: input, shape index: {}]   ;;  %s3024_s5 = inlined_call_operand.vmem [shape: f32[10,60], index: 5, kind: input, shape index: {}]   ;;  %s3025_s6 = inlined_call_operand.vmem [shape: f32[10,1], index: 6, kind: input, shape index: {}]   ;;  %s3026_s7 = inlined_call_operand.vmem [shape: f32[5,30], index: 7, kind: input, shape index: {}]   ;;  %s3027_s8 = inlined_call_operand.vmem [shape: f32[5,1], index: 8, kind: input, shape index: {}]   ;;  %s3028_s9 = inlined_call_operand.vmem [shape: f32[2,5,4], index: 9, kind: output, shape index: {}]  }
   0x1 LB: > { %s1994_s10 = sadd.s32 4294967295, %s2522_s30   ;;  %p1998_p0 = scmp.ge.s32.totalorder %s2522_s30, 1  ;;  %s2522_s30 = sphi %s2578_s30, %s19_s30  }
   0x2   : > { %p286_p1 = scmp.lt.s32.totalorder %s2522_s30, 3 }
   0x4   : > { %p287_p2 = pnand %p1998_p0, %p286_p1 }
   0x5   : > { %p320_p3 = scmp.lt.s32.totalorder (!%p287_p2), %s1994_s10, 1 }
   0x6   : > { %290 = sbr.rel (%p287_p2) target bundleno = 1737 (0x6c9), region = 56 }
   0xb   : > { %v329_v0 = vlaneseq  ;;  %v2524_v1 = vmov 0.0   ;;  %vm2525_vm0 = vmmov 0   ;;  %vm366_vm1 = vcmask 1041408   ;;  %s3030_s10 = smov (!%p320_p3, %s1994_s10), 1  ;;  %v640_v19 = vld [vmem:[%s3021_s2] sm:$0xff]  ;;  %v642_v21 = vld [vmem:[%s3021_s2 + $0x10] sm:$0xff] }
   0xc   : > { %2240 = vmatprep.subr.mxu0 %v2524_v1  ;;  %2257 = vmatprep.subr.mxu1 %v2524_v1  ;;  %v2526_v14 = vmov 1.0   ;;  %s1999_s11 = sshll.u32 %s3030_s10, 2  ;;  %v2527_v20 = vmov 0   ;;  %v641_v22 = vld [vmem:[%s3021_s2 + $0x8] sm:$0xff]  ;;  %v643_v23 = vld [vmem:[%s3021_s2 + $0x18] sm:$0xff]  ;;  %v644_v24 = vld [vmem:[%s3021_s2 + $0x20] sm:$0xff] }
   0xd   : > { %v2588_v2 = vshrl.u32 %v329_v0, 7  ;;  %v338_v3 = vand.u32 127, %v329_v0  ;;  %2254 = vmatprep.mubr.msk.f32.mxu0 %vm2525_vm0, %v2524_v1  ;;  %2271 = vmatprep.mubr.msk.f32.mxu1 %vm2525_vm0, %v2524_v1  ;;  %s323_s14 = scalar_lea.vmem %s3019_s0, %s1999_s11  ;;  %v1121_v25 = vld [vmem:[%s3023_s4] sm:$0xff]  ;;  %v1122_v26 = vld [vmem:[%s3023_s4 + $0x8] sm:$0xff]  ;;  %v1123_v27 = vld [vmem:[%s3023_s4 + $0x10] sm:$0xf] }
   0xe   : > { %v328_v17 = vld [vmem:[%s323_s14] sm:$0xf]  ;;  %2514 = vset.pattern.permute.xlu0 %v2527_v20  ;;  %2515 = vset.pattern.permute.xlu1 %v2527_v20  ;;  %v1503_v30 = vld [vmem:[%s3025_s6 + $0x8] sm:$0x3]  ;;  %v637_v42 = vld [vmem:[%s3020_s1 + $0x10] sm:$0xff]  ;;  %s2000_s21 = sshll.u32 %s3030_s10, 3 }
   0xf   : > { %v336_v4 = vadd.s32 48, %v2588_v2  ;;  %v2595_v5 = vmul.u32 2, %v338_v3  ;;  %v2598_v6 = vadd.s32 40, %v2588_v2  ;;  %v2605_v9 = vadd.s32 32, %v2588_v2  ;;  %647 = vperm.xlu0 %2514, %v640_v19   ;;  %657 = vperm.xlu1 %2515, %v642_v21   ;;  %v1502_v29 = vld [vmem:[%s3025_s6] sm:$0xff]  ;;  %v636_v41 = vld [vmem:[%s3020_s1 + $0x8] sm:$0xff]  ;;  %s327_s24 = scalar_lea.vmem %s3028_s9, %s2000_s21 }
  0x10   : > { %v2608_v10 = vadd.s32 24, %v2588_v2  ;;  %v2625_v13 = vadd.s32 16, %v2588_v2  ;;  %v2634_v15 = vadd.s32 8, %v2588_v2  ;;  %v1853_v31 = vld [vmem:[%s3027_s8] sm:$0x1f]  ;;  %v638_v43 = vld [vmem:[%s3020_s1 + $0x18] sm:$0xff] }
  0x11   : > { %v340_v7 = vadd.s32 4294967288, %v2595_v5  ;;  %v440_v8 = vadd.s32 4294967289, %v2595_v5  ;;  %v535_v16 = vadd.s32 4294967290, %v2595_v5  ;;  %v2722_v28 = vadd.s32 4294967295, %v2595_v5  ;;  %v635_v38 = vld [vmem:[%s3020_s1] sm:$0xff] }
  0x12   : > { %v639_v44 = vld [vmem:[%s3020_s1 + $0x20] sm:$0xff]  ;;  %v2812_v47 = vadd.s32 1, %v2595_v5 }
  0x13   : > { %vm347_vm2 = vcmp.eq.s32.totalorder %v336_v4, %v340_v7  ;;  %vm447_vm3 = vcmp.eq.s32.totalorder %v336_v4, %v440_v8  ;;  %vm346_vm4 = vcmp.eq.s32.totalorder %v2598_v6, %v340_v7  ;;  %vm446_vm5 = vcmp.eq.s32.totalorder %v2598_v6, %v440_v8  ;;  %652 = vperm.xlu0 %2514, %v641_v22  }
  0x14   : > { %v2007_v11 = vsel %vm347_vm2, 1.0, %v2524_v1  ;;  %v2022_v12 = vsel %vm447_vm3, 1.0, %v2524_v1  ;;  %vm345_vm6 = vcmp.eq.s32.totalorder %v2605_v9, %v340_v7  ;;  %vm445_vm7 = vcmp.eq.s32.totalorder %v2605_v9, %v440_v8  ;;  %662 = vperm.xlu1 %2515, %v643_v23  }
  0x15   : > { %2241 = vmatpush3.msk.msra.mxu0 %vm366_vm1, %v2007_v11  ;;  %2258 = vmatpush3.msk.msra.mxu1 %vm366_vm1, %v2022_v12  ;;  %vm344_vm8 = vcmp.eq.s32.totalorder %v2608_v10, %v340_v7  ;;  %vm444_vm9 = vcmp.eq.s32.totalorder %v2608_v10, %v440_v8  ;;  %vm343_vm10 = vcmp.eq.s32.totalorder %v2625_v13, %v340_v7  ;;  %vm362_vm3 = vcmask 408576  }
  0x16   : > { %2242 = vmatprep.subr.mxu0 %v2524_v1  ;;  %2259 = vmatprep.subr.mxu1 %v2524_v1  ;;  %vm443_vm11 = vcmp.eq.s32.totalorder %v2625_v13, %v440_v8  ;;  %vm342_vm12 = vcmp.eq.s32.totalorder %v2634_v15, %v340_v7  ;;  %vm442_vm13 = vcmp.eq.s32.totalorder %v2634_v15, %v440_v8 }
  0x17   : > { %2243 = vmatpush3.msk.msra.mxu0 %vm346_vm4, %v2526_v14  ;;  %2260 = vmatpush3.msk.msra.mxu1 %vm446_vm5, %v2526_v14  ;;  %vm341_vm14 = vcmp.eq.s32.totalorder %v2588_v2, %v340_v7  ;;  %vm441_vm15 = vcmp.eq.s32.totalorder %v2588_v2, %v440_v8  ;;  %vm542_vm2 = vcmp.eq.s32.totalorder %v336_v4, %v535_v16 }
  0x18   : > { %2244 = vmatprep.subr.mxu0 %v2524_v1  ;;  %2261 = vmatprep.subr.mxu1 %v2524_v1  ;;  %v2037_v18 = vsel %vm542_vm2, 1.0, %v2524_v1  ;;  %vm541_vm4 = vcmp.eq.s32.totalorder %v2598_v6, %v535_v16  ;;  %vm540_vm5 = vcmp.eq.s32.totalorder %v2605_v9, %v535_v16  ;;  %vm796_vm2 = vcmp.eq.s32.totalorder %v2634_v15, %v2722_v28 }
  0x19   : > { %2245 = vmatpush3.msk.msra.mxu0 %vm345_vm6, %v2526_v14  ;;  %2262 = vmatpush3.msk.msra.mxu1 %vm445_vm7, %v2526_v14  ;;  %vm539_vm6 = vcmp.eq.s32.totalorder %v2608_v10, %v535_v16  ;;  %vm538_vm7 = vcmp.eq.s32.totalorder %v2625_v13, %v535_v16 }
  0x1a   : > { %2246 = vmatprep.subr.mxu0 %v2524_v1  ;;  %2263 = vmatprep.subr.mxu1 %v2524_v1 }
  0x1b   : > { %2247 = vmatpush3.msk.msra.mxu0 %vm344_vm8, %v2526_v14  ;;  %2264 = vmatpush3.msk.msra.mxu1 %vm444_vm9, %v2526_v14  ;;  %vm537_vm8 = vcmp.eq.s32.totalorder %v2634_v15, %v535_v16  ;;  %vm536_vm9 = vcmp.eq.s32.totalorder %v2588_v2, %v535_v16 }
  0x1c   : > { %2248 = vmatprep.subr.mxu0 %v2524_v1  ;;  %2265 = vmatprep.subr.mxu1 %v2524_v1 }
  0x1d   : > { %2249 = vmatpush3.msk.msra.mxu0 %vm343_vm10, %v2526_v14  ;;  %2266 = vmatpush3.msk.msra.mxu1 %vm443_vm11, %v2526_v14  ;;  %vm798_vm10 = vcmp.eq.s32.totalorder %v2608_v10, %v2722_v28  ;;  %vm633_vm11 = vcmask 1043456  }
  0x1e   : > { %2250 = vmatprep.subr.mxu0 %v2524_v1  ;;  %2267 = vmatprep.subr.mxu1 %v2524_v1 }
  0x1f   : > { %2251 = vmatpush3.msk.msra.mxu0 %vm342_vm12, %v2526_v14  ;;  %2268 = vmatpush3.msk.msra.mxu1 %vm442_vm13, %v2526_v14  ;;  %vm670_vm12 = vcmask 97280   ;;  %vm916_vm13 = vcmp.eq.s32.totalorder %v2608_v10, %v2595_v5 }
  0x20   : > { %2252 = vmatprep.subr.mxu0 %v2524_v1  ;;  %2269 = vmatprep.subr.mxu1 %v2524_v1 }
  0x21   : > { %2253 = vmatpush3.msk.msra.mxu0 %vm341_vm14, %v2526_v14  ;;  %2270 = vmatpush3.msk.msra.mxu1 %vm441_vm15, %v2526_v14  ;;  %vm797_vm14 = vcmp.eq.s32.totalorder %v2625_v13, %v2722_v28  ;;  %vm915_vm15 = vcmp.eq.s32.totalorder %v2625_v13, %v2595_v5 }
  0x22   : > { %2255 = vmatmul.mubr.msk.f32.vlgmr.msra.gmra.mxu0 %vm362_vm3, %v328_v17  ;;  %2272 = vmatmul.mubr.msk.f32.vlgmr.msra.gmra.mxu1 %vm362_vm3, %v328_v17 }
  0x23   : > { %2274 = vmatprep.subr.mxu0 %v2524_v1  ;;  %2288 = vmatprep.mubr.msk.f32.mxu0 %vm2525_vm0, %v2524_v1 }
  0x24   : > { %2275 = vmatpush3.msk.msra.mxu0 %vm366_vm1, %v2037_v18  ;;  %2291 = vmatprep.subr.mxu1 %v2524_v1 }
  0x25   : > { %2276 = vmatprep.subr.mxu0 %v2524_v1  ;;  %2295 = vmatprep.mubr.msk.f32.mxu1 %vm2525_vm0, %v2524_v1 }
  0x26   : > { %2277 = vmatpush3.msk.msra.mxu0 %vm541_vm4, %v2526_v14  ;;  %667 = vperm.xlu0 %2514, %v644_v24   ;;  %vm795_vm4 = vcmp.eq.s32.totalorder %v2588_v2, %v2722_v28 }
  0x27   : > { %2278 = vmatprep.subr.mxu0 %v2524_v1  ;;  %1126 = vperm.xlu1 %2515, %v1121_v25  }
  0x28   : > { %2279 = vmatpush3.msk.msra.mxu0 %vm540_vm5, %v2526_v14  ;;  %vm913_vm5 = vcmp.eq.s32.totalorder %v2588_v2, %v2595_v5 }
  0x29   : > { %2280 = vmatprep.subr.mxu0 %v2524_v1 }
  0x2a   : > { %2281 = vmatpush3.msk.msra.mxu0 %vm539_vm6, %v2526_v14  ;;  %1131 = vperm.xlu0 %2514, %v1122_v26  }
  0x2b   : > { %2282 = vmatprep.subr.mxu0 %v2524_v1  ;;  %1136 = vperm.xlu1 %2515, %v1123_v27  }
  0x2c   : > { %2283 = vmatpush3.msk.msra.mxu0 %vm538_vm7, %v2526_v14  ;;  %vm807_vm7 = vcmask 261120  }
  0x2d   : > { %2284 = vmatprep.subr.mxu0 %v2524_v1 }
  0x2e   : > { %2285 = vmatpush3.msk.msra.mxu0 %vm537_vm8, %v2526_v14  ;;  %1506 = vperm.xlu0 %2514, %v1502_v29   ;;  %vm1019_vm8 = vcmp.eq.s32.totalorder %v2608_v10, %v2812_v47 }
  0x2f   : > { %2286 = vmatprep.subr.mxu0 %v2524_v1  ;;  %1511 = vperm.xlu1 %2515, %v1503_v30  }
  0x30   : > { %2287 = vmatpush3.msk.msra.mxu0 %vm536_vm9, %v2526_v14  ;;  %vm1018_vm9 = vcmp.eq.s32.totalorder %v2625_v13, %v2812_v47 }
  0x31   : > { %2289 = vmatmul.mubr.msk.f32.vlgmr.msra.gmra.mxu0 %vm362_vm3, %v328_v17  ;;  %2310 = vmatprep.subr.mxu0 %v2524_v1  ;;  %vm914_vm3 = vcmp.eq.s32.totalorder %v2634_v15, %v2595_v5 }
  0x32   : > { %2318 = vmatprep.mubr.msk.f32.mxu0 %vm2525_vm0, %v2524_v1  ;;  %2311 = vmatpush3.msk.msra.mxu0 %vm798_vm10, %v2526_v14 }
  0x33   : > { %2312 = vmatprep.subr.mxu0 %v2524_v1  ;;  %1856 = vperm.xlu0 %2514, %v1853_v31  }
  0x34   : > { %2313 = vmatpush3.msk.msra.mxu0 %vm797_vm14, %v2526_v14  ;;  %vm1016_vm14 = vcmp.eq.s32.totalorder %v2588_v2, %v2812_v47 }
  0x35   : > { %2314 = vmatprep.subr.mxu0 %v2524_v1 }
  0x36   : > { %2315 = vmatpush3.msk.msra.mxu0 %vm796_vm2, %v2526_v14 }
  0x37   : > { %2316 = vmatprep.subr.mxu0 %v2524_v1 }
  0x38   : > { %2317 = vmatpush3.msk.msra.mxu0 %vm795_vm4, %v2526_v14 }
  0x39   : > { %2356 = vmatprep.subr.mxu0 %v2524_v1 }
  0x8a   : > { %v648_v45 = vpop.permute.xlu0 %647  ;;  %v658_v55 = vpop.permute.xlu1 %657 }
  0x8e   : > { %v653_v51 = vpop.permute.xlu0 %652 }
  0x8f   : > { %v663_v63 = vpop.permute.xlu1 %662 }
  0xa1   : > { %v668_v8 = vpop.permute.xlu0 %667 }
  0xe2   : > { %v436_v32 = vpop.f32.mrf.mxu0  ;;  %v531_v33 = vpop.f32.mrf.mxu1 }
  0xe3   : > { %v631_v36 = vrot.slane %v531_v33, 4 }
  0xe4   : > { %v2256_v34 = vpop.f32.mrf.mxu0  ;;  %v2273_v35 = vpop.f32.mrf.mxu1 }
  0xe5   : > { %v634_v40 = vsel %vm633_vm11, %v436_v32, %v631_v36 }
  0xf1   : > { %v626_v37 = vpop.f32.mrf.mxu0 }
  0xf2   : > { %2292 = vmatpush3.msk.msra.mxu1 %vm633_vm11, %v626_v37 }
  0xf3   : > { %v2290_v39 = vpop.f32.mrf.mxu0  ;;  %2293 = vmatprep.subr.mxu1 %v2524_v1 }
  0xf4   : > { %2294 = vmatpush3.msra.mxu1 %v634_v40 }
  0xf5   : > { %2296 = vmatmul.mubr.msk.f32.vlgmr.msra.gmra.mxu1 %vm670_vm12, %v635_v38  ;;  %2333 = vmatprep.subr.mxu1 %v2524_v1 }
  0xf6   : > { %2298 = vmatprep.mubr.msk.f32.mxu1 %vm2525_vm0, %v2524_v1  ;;  %2334 = vmatpush3.msk.msra.mxu1 %vm916_vm13, %v2526_v14 }
  0xf7   : > { %2335 = vmatprep.subr.mxu1 %v2524_v1 }
  0xf8   : > { %2336 = vmatpush3.msk.msra.mxu1 %vm915_vm15, %v2526_v14 }
  0xf9   : > { %2299 = vmatmul.mubr.msk.f32.gmra.mxu1 %vm670_vm12, %v636_v41  ;;  %2337 = vmatprep.subr.mxu1 %v2524_v1 }
  0xfa   : > { %2301 = vmatprep.mubr.msk.f32.mxu1 %vm2525_vm0, %v2524_v1  ;;  %2338 = vmatpush3.msk.msra.mxu1 %vm914_vm3, %v2526_v14 }
  0xfb   : > { %2339 = vmatprep.subr.mxu1 %v2524_v1 }
  0xfc   : > { %2340 = vmatpush3.msk.msra.mxu1 %vm913_vm5, %v2526_v14 }
  0xfd   : > { %2302 = vmatmul.mubr.msk.f32.gmra.mxu1 %vm670_vm12, %v637_v42  ;;  %2379 = vmatprep.subr.mxu1 %v2524_v1 }
  0xfe   : > { %2304 = vmatprep.mubr.msk.f32.mxu1 %vm2525_vm0, %v2524_v1 }
 0x101   : > { %2305 = vmatmul.mubr.msk.f32.gmra.mxu1 %vm670_vm12, %v638_v43 }
 0x102   : > { %2307 = vmatprep.mubr.msk.f32.mxu1 %vm2525_vm0, %v2524_v1 }
 0x105   : > { %2308 = vmatmul.mubr.msk.f32.gmra.mxu1 %vm670_vm12, %v639_v44  ;;  %vm1017_vm12 = vcmp.eq.s32.totalorder %v2634_v15, %v2812_v47 }
 0x106   : > { %2341 = vmatprep.mubr.msk.f32.mxu1 %vm2525_vm0, %v2524_v1 }
 0x1b5   : > { %v755_v46 = vpop.f32.mrf.mxu1 }
 0x1b6   : > { %v756_v48 = vadd.f32 %v755_v46, %v648_v45 }
 0x1b7   : > { %v2297_v49 = vpop.f32.mrf.mxu1 }
 0x1b8   : > { %vm779_vm6 = vcmp.ge.f32.partialorder %v756_v48, 0.0  ;;  %v784_v50 = vmul.f32 0.01, %v756_v48  ;;  %v1118_v49 = vld [vmem:[%s3022_s3] sm:$0xff] }
 0x1b9   : > { %v760_v52 = vpop.f32.mrf.mxu1 }
 0x1ba   : > { %v789_v53 = vsel %vm779_vm6, %v756_v48, %v784_v50  ;;  %v761_v54 = vadd.f32 %v760_v52, %v653_v51  ;;  %v1119_v50 = vld [vmem:[%s3022_s3 + $0x8] sm:$0xff]  ;;  %v1120_v51 = vld [vmem:[%s3022_s3 + $0x10] sm:$0xf]  ;;  %v1127_v52 = vpop.permute.xlu1 %1126 }
 0x1bb   : > { %v2300_v56 = vpop.f32.mrf.mxu1  ;;  %2319 = vmatmul.mubr.msk.f32.vlgmr.msra.gmra.mxu0 %vm807_vm7, %v789_v53  ;;  %2342 = vmatmul.mubr.msk.f32.vlgmr.msra.gmra.mxu1 %vm807_vm7, %v789_v53 }
 0x1bc   : > { %vm780_vm10 = vcmp.ge.f32.partialorder %v761_v54, 0.0  ;;  %v785_v57 = vmul.f32 0.01, %v761_v54  ;;  %2357 = vmatpush3.msk.msra.mxu0 %vm1019_vm8, %v2526_v14  ;;  %2321 = vmatprep.mubr.msk.f32.mxu0 %vm2525_vm0, %v2524_v1 }
 0x1bd   : > { %v765_v58 = vpop.f32.mrf.mxu1  ;;  %2344 = vmatprep.mubr.msk.f32.mxu1 %vm2525_vm0, %v2524_v1  ;;  %2358 = vmatprep.subr.mxu0 %v2524_v1 }
 0x1be   : > { %v766_v59 = vadd.f32 %v765_v58, %v658_v55  ;;  %v790_v60 = vsel %vm780_vm10, %v761_v54, %v785_v57  ;;  %2359 = vmatpush3.msk.msra.mxu0 %vm1018_vm9, %v2526_v14  ;;  %v1132_v57 = vpop.permute.xlu0 %1131  ;;  %vm1514_vm10 = vcmask 490496  }
 0x1bf   : > { %v2303_v61 = vpop.f32.mrf.mxu1  ;;  %2322 = vmatmul.mubr.msk.f32.gmra.mxu0 %vm807_vm7, %v790_v60  ;;  %2345 = vmatmul.mubr.msk.f32.gmra.mxu1 %vm807_vm7, %v790_v60 }
 0x1c0   : > { %vm781_vm13 = vcmp.ge.f32.partialorder %v766_v59, 0.0  ;;  %v786_v62 = vmul.f32 0.01, %v766_v59  ;;  %2324 = vmatprep.mubr.msk.f32.mxu0 %vm2525_vm0, %v2524_v1  ;;  %2347 = vmatprep.mubr.msk.f32.mxu1 %vm2525_vm0, %v2524_v1 }
 0x1c1   : > { %v770_v0 = vpop.f32.mrf.mxu1  ;;  %2360 = vmatprep.subr.mxu0 %v2524_v1 }
 0x1c2   : > { %v771_v3 = vadd.f32 %v770_v0, %v663_v63  ;;  %v791_v4 = vsel %vm781_vm13, %v766_v59, %v786_v62  ;;  %2361 = vmatpush3.msk.msra.mxu0 %vm1017_vm12, %v2526_v14  ;;  %v1137_v63 = vpop.permute.xlu1 %1136  ;;  %vm1605_vm13 = vcmask 64512  }
 0x1c3   : > { %v2306_v6 = vpop.f32.mrf.mxu1  ;;  %2325 = vmatmul.mubr.msk.f32.gmra.mxu0 %vm807_vm7, %v791_v4  ;;  %2348 = vmatmul.mubr.msk.f32.gmra.mxu1 %vm807_vm7, %v791_v4 }
 0x1c4   : > { %vm782_vm15 = vcmp.ge.f32.partialorder %v771_v3, 0.0  ;;  %v787_v7 = vmul.f32 0.01, %v771_v3  ;;  %2327 = vmatprep.mubr.msk.f32.mxu0 %vm2525_vm0, %v2524_v1  ;;  %2350 = vmatprep.mubr.msk.f32.mxu1 %vm2525_vm0, %v2524_v1 }
 0x1c5   : > { %v775_v9 = vpop.f32.mrf.mxu1  ;;  %2362 = vmatprep.subr.mxu0 %v2524_v1 }
 0x1c6   : > { %v776_v10 = vadd.f32 %v775_v9, %v668_v8  ;;  %v792_v11 = vsel %vm782_vm15, %v771_v3, %v787_v7  ;;  %2363 = vmatpush3.msk.msra.mxu0 %vm1016_vm14, %v2526_v14  ;;  %v1500_v8 = vld [vmem:[%s3024_s5] sm:$0xff] }
 0x1c7   : > { %v2309_v12 = vpop.f32.mrf.mxu1  ;;  %2328 = vmatmul.mubr.msk.f32.gmra.mxu0 %vm807_vm7, %v792_v11  ;;  %2351 = vmatmul.mubr.msk.f32.gmra.mxu1 %vm807_vm7, %v792_v11 }
 0x1c8   : > { %vm783_vm6 = vcmp.ge.f32.partialorder %v776_v10, 0.0  ;;  %v788_v13 = vmul.f32 0.01, %v776_v10  ;;  %2330 = vmatprep.mubr.msk.f32.mxu0 %vm2525_vm0, %v2524_v1  ;;  %2353 = vmatprep.mubr.msk.f32.mxu1 %vm2525_vm0, %v2524_v1 }
 0x1c9   : > { %2418 = vmatprep.subr.mxu0 %v2524_v1 }
 0x1ca   : > { %v793_v16 = vsel %vm783_vm6, %v776_v10, %v788_v13 }
 0x1cb   : > { %2331 = vmatmul.mubr.msk.f32.gmra.mxu0 %vm807_vm7, %v793_v16  ;;  %2354 = vmatmul.mubr.msk.f32.gmra.mxu1 %vm807_vm7, %v793_v16 }
 0x1cc   : > { %2364 = vmatprep.mubr.msk.f32.mxu0 %vm2525_vm0, %v2524_v1  ;;  %2409 = vmatprep.mubr.msk.f32.mxu1 %vm2525_vm0, %v2524_v1 }
 0x1cf   : > { %2365 = vmatmul.mubr.msk.f32.vlgmr.msra.gmra.mxu0 %vm807_vm7, %v789_v53 }
 0x1d0   : > { %2367 = vmatprep.mubr.msk.f32.mxu0 %vm2525_vm0, %v2524_v1  ;;  %2419 = vmatpush3.msk.msra.mxu0 %vm796_vm2, %v2526_v14  ;;  %vm1139_vm2 = vcmask 982016  }
 0x1d1   : > { %2420 = vmatprep.subr.mxu0 %v2524_v1 }
 0x1d2   : > { %2421 = vmatpush3.msk.msra.mxu0 %vm795_vm4, %v2526_v14 }
 0x1d3   : > { %2368 = vmatmul.mubr.msk.f32.gmra.mxu0 %vm807_vm7, %v790_v60  ;;  %2444 = vmatprep.subr.mxu0 %v2524_v1 }
 0x1d4   : > { %2370 = vmatprep.mubr.msk.f32.mxu0 %vm2525_vm0, %v2524_v1 }
 0x1d7   : > { %2371 = vmatmul.mubr.msk.f32.gmra.mxu0 %vm807_vm7, %v791_v4 }
 0x1d8   : > { %2373 = vmatprep.mubr.msk.f32.mxu0 %vm2525_vm0, %v2524_v1 }
 0x1db   : > { %2374 = vmatmul.mubr.msk.f32.gmra.mxu0 %vm807_vm7, %v792_v11 }
 0x1dc   : > { %2376 = vmatprep.mubr.msk.f32.mxu0 %vm2525_vm0, %v2524_v1 }
 0x1df   : > { %2377 = vmatmul.mubr.msk.f32.gmra.mxu0 %vm807_vm7, %v793_v16  ;;  %vm1238_vm7 = vcmask 130048  }
 0x1e0   : > { %2422 = vmatprep.mubr.msk.f32.mxu0 %vm2525_vm0, %v2524_v1 }
 0x27b   : > { %v889_v17 = vpop.f32.mrf.mxu0  ;;  %v991_v18 = vpop.f32.mrf.mxu1 }
 0x27d   : > { %v2320_v19 = vpop.f32.mrf.mxu0  ;;  %v2343_v20 = vpop.f32.mrf.mxu1 }
 0x27f   : > { %v894_v21 = vpop.f32.mrf.mxu0  ;;  %v996_v22 = vpop.f32.mrf.mxu1 }
 0x281   : > { %v2323_v23 = vpop.f32.mrf.mxu0  ;;  %v2346_v24 = vpop.f32.mrf.mxu1 }
 0x283   : > { %v899_v25 = vpop.f32.mrf.mxu0  ;;  %v1001_v26 = vpop.f32.mrf.mxu1 }
 0x285   : > { %v2326_v27 = vpop.f32.mrf.mxu0  ;;  %v2349_v29 = vpop.f32.mrf.mxu1 }
 0x287   : > { %v904_v30 = vpop.f32.mrf.mxu0  ;;  %v1006_v31 = vpop.f32.mrf.mxu1 }
 0x289   : > { %v2329_v32 = vpop.f32.mrf.mxu0  ;;  %v2352_v33 = vpop.f32.mrf.mxu1 }
 0x28b   : > { %v909_v34 = vpop.f32.mrf.mxu0  ;;  %v1011_v35 = vpop.f32.mrf.mxu1 }
 0x28d   : > { %v2332_v36 = vpop.f32.mrf.mxu0  ;;  %v2355_v37 = vpop.f32.mrf.mxu1 }
 0x28e   : > { %v1512_v36 = vpop.permute.xlu1 %1511 }
 0x28f   : > { %v1094_v38 = vpop.f32.mrf.mxu0 }
 0x291   : > { %v2366_v39 = vpop.f32.mrf.mxu0 }
 0x292   : > { %v1507_v39 = vpop.permute.xlu0 %1506 }
 0x293   : > { %v1099_v40 = vpop.f32.mrf.mxu0 }
 0x295   : > { %v2369_v41 = vpop.f32.mrf.mxu0 }
 0x297   : > { %v1104_v42 = vpop.f32.mrf.mxu0 }
 0x299   : > { %v2372_v43 = vpop.f32.mrf.mxu0 }
 0x29b   : > { %v1109_v44 = vpop.f32.mrf.mxu0 }
 0x29d   : > { %v2375_v45 = vpop.f32.mrf.mxu0 }
 0x29f   : > { %v1114_v46 = vpop.f32.mrf.mxu0 }
 0x2a0   : > { %2380 = vmatpush3.msra.mxu1 %v1114_v46 }
 0x2a1   : > { %v2378_v48 = vpop.f32.mrf.mxu0  ;;  %2381 = vmatprep.subr.mxu1 %v2524_v1 }
 0x2a2   : > { %2382 = vmatpush3.msra.mxu1 %v1109_v44 }
 0x2a3   : > { %2383 = vmatprep.subr.mxu1 %v2524_v1 }
 0x2a4   : > { %2384 = vmatpush3.msra.mxu1 %v1104_v42 }
 0x2a5   : > { %2385 = vmatprep.subr.mxu1 %v2524_v1 }
 0x2a6   : > { %2386 = vmatpush3.msra.mxu1 %v1099_v40 }
 0x2a7   : > { %2387 = vmatprep.subr.mxu1 %v2524_v1 }
 0x2a8   : > { %2388 = vmatpush3.msra.mxu1 %v1094_v38 }
 0x2a9   : > { %2389 = vmatprep.subr.mxu1 %v2524_v1 }
 0x2aa   : > { %2390 = vmatpush3.msra.mxu1 %v1011_v35  ;;  %v1501_v35 = vld [vmem:[%s3024_s5 + $0x8] sm:$0x3] }
 0x2ab   : > { %2391 = vmatprep.subr.mxu1 %v2524_v1 }
 0x2ac   : > { %2392 = vmatpush3.msra.mxu1 %v1006_v31 }
 0x2ad   : > { %2393 = vmatprep.subr.mxu1 %v2524_v1 }
 0x2ae   : > { %2394 = vmatpush3.msra.mxu1 %v1001_v26 }
 0x2af   : > { %2395 = vmatprep.subr.mxu1 %v2524_v1 }
 0x2b0   : > { %2396 = vmatpush3.msra.mxu1 %v996_v22 }
 0x2b1   : > { %2397 = vmatprep.subr.mxu1 %v2524_v1 }
 0x2b2   : > { %2398 = vmatpush3.msra.mxu1 %v991_v18 }
 0x2b3   : > { %2399 = vmatprep.subr.mxu1 %v2524_v1 }
 0x2b4   : > { %2400 = vmatpush3.msra.mxu1 %v909_v34 }
 0x2b5   : > { %2401 = vmatprep.subr.mxu1 %v2524_v1 }
 0x2b6   : > { %2402 = vmatpush3.msra.mxu1 %v904_v30 }
 0x2b7   : > { %2403 = vmatprep.subr.mxu1 %v2524_v1 }
 0x2b8   : > { %2404 = vmatpush3.msra.mxu1 %v899_v25 }
 0x2b9   : > { %2405 = vmatprep.subr.mxu1 %v2524_v1 }
 0x2ba   : > { %2406 = vmatpush3.msra.mxu1 %v894_v21 }
 0x2bb   : > { %2407 = vmatprep.subr.mxu1 %v2524_v1 }
 0x2bc   : > { %2408 = vmatpush3.msra.mxu1 %v889_v17 }
 0x2bd   : > { %2410 = vmatmul.mubr.msk.f32.vlgmr.msra.gmra.mxu1 %vm1139_vm2, %v1118_v49  ;;  %2431 = vmatprep.subr.mxu1 %v2524_v1 }
 0x2be   : > { %2412 = vmatprep.mubr.msk.f32.mxu1 %vm2525_vm0, %v2524_v1  ;;  %2432 = vmatpush3.msk.msra.mxu1 %vm914_vm3, %v2526_v14 }
 0x2bf   : > { %2433 = vmatprep.subr.mxu1 %v2524_v1 }
 0x2c0   : > { %2434 = vmatpush3.msk.msra.mxu1 %vm913_vm5, %v2526_v14 }
 0x2c1   : > { %2413 = vmatmul.mubr.msk.f32.gmra.mxu1 %vm1139_vm2, %v1119_v50 }
 0x2c2   : > { %2415 = vmatprep.mubr.msk.f32.mxu1 %vm2525_vm0, %v2524_v1 }
 0x2c5   : > { %2416 = vmatmul.mubr.msk.f32.gmra.mxu1 %vm1139_vm2, %v1120_v51 }
 0x2c6   : > { %2435 = vmatprep.mubr.msk.f32.mxu1 %vm2525_vm0, %v2524_v1 }
 0x37d   : > { %v1215_v53 = vpop.f32.mrf.mxu1 }
 0x37e   : > { %v1216_v54 = vadd.f32 %v1215_v53, %v1127_v52 }
 0x37f   : > { %v2411_v55 = vpop.f32.mrf.mxu1 }
 0x380   : > { %vm1229_vm3 = vcmp.ge.f32.partialorder %v1216_v54, 0.0  ;;  %v1232_v56 = vmul.f32 0.01, %v1216_v54 }
 0x381   : > { %v1220_v58 = vpop.f32.mrf.mxu1 }
 0x382   : > { %v1235_v59 = vsel %vm1229_vm3, %v1216_v54, %v1232_v56  ;;  %v1221_v60 = vadd.f32 %v1220_v58, %v1132_v57  ;;  %v1852_v57 = vld [vmem:[%s3026_s7] sm:$0x1f]  ;;  %v1857_v58 = vpop.permute.xlu0 %1856 }
 0x383   : > { %v2414_v61 = vpop.f32.mrf.mxu1  ;;  %2423 = vmatmul.mubr.msk.f32.vlgmr.msra.gmra.mxu0 %vm1238_vm7, %v1235_v59  ;;  %2436 = vmatmul.mubr.msk.f32.vlgmr.msra.gmra.mxu1 %vm1238_vm7, %v1235_v59 }
 0x384   : > { %vm1230_vm8 = vcmp.ge.f32.partialorder %v1221_v60, 0.0  ;;  %v1233_v62 = vmul.f32 0.01, %v1221_v60  ;;  %2445 = vmatpush3.msk.msra.mxu0 %vm1017_vm12, %v2526_v14  ;;  %2425 = vmatprep.mubr.msk.f32.mxu0 %vm2525_vm0, %v2524_v1 }
 0x385   : > { %v1225_v0 = vpop.f32.mrf.mxu1  ;;  %2438 = vmatprep.mubr.msk.f32.mxu1 %vm2525_vm0, %v2524_v1  ;;  %2446 = vmatprep.subr.mxu0 %v2524_v1 }
 0x386   : > { %v1226_v3 = vadd.f32 %v1225_v0, %v1137_v63  ;;  %v1236_v4 = vsel %vm1230_vm8, %v1221_v60, %v1233_v62  ;;  %2447 = vmatpush3.msk.msra.mxu0 %vm1016_vm14, %v2526_v14 }
 0x387   : > { %v2417_v6 = vpop.f32.mrf.mxu1  ;;  %2426 = vmatmul.mubr.msk.f32.gmra.mxu0 %vm1238_vm7, %v1236_v4  ;;  %2439 = vmatmul.mubr.msk.f32.gmra.mxu1 %vm1238_vm7, %v1236_v4 }
 0x388   : > { %vm1231_vm9 = vcmp.ge.f32.partialorder %v1226_v3, 0.0  ;;  %v1234_v15 = vmul.f32 0.01, %v1226_v3  ;;  %2428 = vmatprep.mubr.msk.f32.mxu0 %vm2525_vm0, %v2524_v1  ;;  %2441 = vmatprep.mubr.msk.f32.mxu1 %vm2525_vm0, %v2524_v1 }
 0x389   : > { %2476 = vmatprep.subr.msk.mxu0 %vm795_vm4, %v2526_v14 }
 0x38a   : > { %v1237_v7 = vsel %vm1231_vm9, %v1226_v3, %v1234_v15 }
 0x38b   : > { %2429 = vmatmul.mubr.msk.f32.gmra.mxu0 %vm1238_vm7, %v1237_v7  ;;  %2442 = vmatmul.mubr.msk.f32.gmra.mxu1 %vm1238_vm7, %v1237_v7 }
 0x38c   : > { %2448 = vmatprep.mubr.msk.f32.mxu0 %vm2525_vm0, %v2524_v1  ;;  %2473 = vmatprep.mubr.msk.f32.mxu1 %vm1514_vm10, %v1500_v8 }
 0x38f   : > { %2449 = vmatmul.mubr.msk.f32.vlgmr.msra.gmra.mxu0 %vm1238_vm7, %v1235_v59 }
 0x390   : > { %2451 = vmatprep.mubr.msk.f32.mxu0 %vm2525_vm0, %v2524_v1  ;;  %2477 = vmatpush3.msk.msra.mxu0 %vm795_vm4, %v2526_v14 }
 0x391   : > { %2486 = vmatprep.subr.msk.mxu0 %vm1016_vm14, %v2526_v14 }
 0x393   : > { %2452 = vmatmul.mubr.msk.f32.gmra.mxu0 %vm1238_vm7, %v1236_v4 }
 0x394   : > { %2454 = vmatprep.mubr.msk.f32.mxu0 %vm2525_vm0, %v2524_v1 }
 0x397   : > { %2455 = vmatmul.mubr.msk.f32.gmra.mxu0 %vm1238_vm7, %v1237_v7 }
 0x443   : > { %v1314_v28 = vpop.f32.mrf.mxu0  ;;  %v1394_v9 = vpop.f32.mrf.mxu1 }
 0x444   : > { %v1491_v31 = vrot.slane %v1394_v9, 4 }
 0x445   : > { %v2424_v10 = vpop.f32.mrf.mxu0  ;;  %v2437_v11 = vpop.f32.mrf.mxu1 }
 0x447   : > { %v1319_v12 = vpop.f32.mrf.mxu0  ;;  %v1399_v13 = vpop.f32.mrf.mxu1 }
 0x448   : > { %v1492_v30 = vrot.slane %v1399_v13, 4 }
 0x449   : > { %v2427_v16 = vpop.f32.mrf.mxu0  ;;  %v2440_v17 = vpop.f32.mrf.mxu1 }
 0x44a   : > { %v1493_v33 = vsel %vm633_vm11, %v1491_v31, %v1492_v30 }
 0x44b   : > { %v1324_v18 = vpop.f32.mrf.mxu0  ;;  %v1404_v19 = vpop.f32.mrf.mxu1 }
 0x44c   : > { %v1494_v27 = vrot.slane %v1404_v19, 4  ;;  %v1499_v34 = vsel %vm633_vm11, %v1324_v18, %v1491_v31 }
 0x44d   : > { %v2430_v20 = vpop.f32.mrf.mxu0  ;;  %v2443_v21 = vpop.f32.mrf.mxu1 }
 0x44e   : > { %v1495_v32 = vsel %vm633_vm11, %v1492_v30, %v1494_v27 }
 0x44f   : > { %v1474_v22 = vpop.f32.mrf.mxu0 }
 0x451   : > { %v2450_v23 = vpop.f32.mrf.mxu0 }
 0x453   : > { %v1479_v24 = vpop.f32.mrf.mxu0 }
 0x455   : > { %v2453_v25 = vpop.f32.mrf.mxu0 }
 0x457   : > { %v1484_v26 = vpop.f32.mrf.mxu0 }
 0x458   : > { %2457 = vmatprep.subr.msk.mxu1 %vm633_vm11, %v1484_v26 }
 0x459   : > { %v2456_v29 = vpop.f32.mrf.mxu0  ;;  %2458 = vmatpush3.msk.msra.mxu1 %vm633_vm11, %v1484_v26 }
 0x45a   : > { %2459 = vmatprep.subr.mxu1 %v1479_v24 }
 0x45b   : > { %2460 = vmatpush3.msra.mxu1 %v1479_v24 }
 0x45c   : > { %2461 = vmatprep.subr.mxu1 %v1474_v22 }
 0x45d   : > { %2462 = vmatpush3.msra.mxu1 %v1474_v22 }
 0x45e   : > { %2463 = vmatprep.subr.mxu1 %v1495_v32 }
 0x45f   : > { %2464 = vmatpush3.msra.mxu1 %v1495_v32 }
 0x460   : > { %2465 = vmatprep.subr.mxu1 %v1493_v33 }
 0x461   : > { %2466 = vmatpush3.msra.mxu1 %v1493_v33 }
 0x462   : > { %2467 = vmatprep.subr.mxu1 %v1499_v34 }
 0x463   : > { %2468 = vmatpush3.msra.mxu1 %v1499_v34 }
 0x464   : > { %2469 = vmatprep.subr.mxu1 %v1319_v12 }
 0x465   : > { %2470 = vmatpush3.msra.mxu1 %v1319_v12 }
 0x466   : > { %2471 = vmatprep.subr.mxu1 %v1314_v28 }
 0x467   : > { %2472 = vmatpush3.msra.mxu1 %v1314_v28 }
 0x468   : > { %2474 = vmatmul.mubr.msk.f32.vlgmr.msra.gmra.mxu1 %vm1514_vm10, %v1501_v35  ;;  %2481 = vmatprep.subr.msk.mxu1 %vm913_vm5, %v2526_v14 }
 0x469   : > { %2482 = vmatpush3.msk.msra.mxu1 %vm913_vm5, %v2526_v14  ;;  %vm1863_vm5 = vcmask 1045504  }
 0x46a   : > { %2491 = vmatprep.subr.mxu1 %v2524_v1 }
 0x528   : > { %v2475_v37 = vpop.f32.mrf.mxu1 }
 0x529   : > { %v1596_v38 = vadd.f32 %v2475_v37, %v1512_v36 }
 0x52a   : > { %v1590_v40 = vpop.f32.mrf.mxu1 }
 0x52b   : > { %v1591_v41 = vadd.f32 %v1590_v40, %v1507_v39  ;;  %v1602_v42 = vmul.f32 0.01, %v1596_v38  ;;  %vm1600_vm4 = vcmp.ge.f32.partialorder %v1596_v38, 0.0 }
 0x52d   : > { %vm1599_vm12 = vcmp.ge.f32.partialorder %v1591_v41, 0.0  ;;  %v1601_v43 = vmul.f32 0.01, %v1591_v41  ;;  %v1604_v45 = vsel %vm1600_vm4, %v1596_v38, %v1602_v42 }
 0x52f   : > { %v1603_v44 = vsel %vm1599_vm12, %v1591_v41, %v1601_v43 }
 0x530   : > { %2478 = vmatprep.mubr.msk.f32.mxu0 %vm1605_vm13, %v1603_v44  ;;  %2483 = vmatprep.mubr.msk.f32.mxu1 %vm1605_vm13, %v1603_v44 }
 0x531   : > { %2479 = vmatmul.mubr.msk.f32.vlgmr.msra.gmra.mxu0 %vm1605_vm13, %v1604_v45  ;;  %2484 = vmatmul.mubr.msk.f32.vlgmr.msra.gmra.mxu1 %vm1605_vm13, %v1604_v45 }
 0x532   : > { %2487 = vmatpush3.msk.msra.mxu0 %vm1016_vm14, %v2526_v14  ;;  %2488 = vmatprep.mubr.msk.f32.mxu0 %vm1605_vm13, %v1603_v44 }
 0x533   : > { %2499 = vmatprep.mubr.msk.f32.mxu1 %vm2525_vm0, %v2524_v1  ;;  %vm1859_vm0 = vcmask 244736  }
 0x535   : > { %2489 = vmatmul.mubr.msk.f32.vlgmr.msra.gmra.mxu0 %vm1605_vm13, %v1604_v45 }
 0x5f1   : > { %v2480_v5 = vpop.f32.mrf.mxu0  ;;  %v2485_v46 = vpop.f32.mrf.mxu1 }
 0x5f2   : > { %v1840_v55 = vrot.slane %v2485_v46, 6 }
 0x5f3   : > { %v1678_v48 = vpop.f32.mrf.mxu0  ;;  %v1753_v49 = vpop.f32.mrf.mxu1 }
 0x5f4   : > { %v1839_v51 = vrot.slane %v1753_v49, 6 }
 0x5f5   : > { %v2490_v50 = vpop.f32.mrf.mxu0 }
 0x5f6   : > { %v1847_v53 = vrot.slane %v2490_v50, 4  ;;  %v1841_v14 = vsel %vm366_vm1, %v1839_v51, %v1840_v55  ;;  %v1850_v56 = vsel %vm366_vm1, %v2480_v5, %v1839_v51 }
 0x5f7   : > { %v1828_v52 = vpop.f32.mrf.mxu0 }
 0x5f8   : > { %v1846_v54 = vrot.slane %v1828_v52, 4 }
 0x5fa   : > { %v1848_v2 = vsel %vm633_vm11, %v1846_v54, %v1847_v53  ;;  %v1851_v47 = vsel %vm633_vm11, %v1841_v14, %v1846_v54  ;;  %vm1939_vm11 = vcmask 28672  }
 0x5fb   : > { %2492 = vmatpush3.msk.msra.mxu1 %vm1863_vm5, %v1848_v2 }
 0x5fc   : > { %2493 = vmatprep.subr.mxu1 %v2524_v1 }
 0x5fd   : > { %2494 = vmatpush3.msra.mxu1 %v1851_v47 }
 0x5fe   : > { %2495 = vmatprep.subr.mxu1 %v2524_v1 }
 0x5ff   : > { %2496 = vmatpush3.msra.mxu1 %v1850_v56 }
 0x600   : > { %2497 = vmatprep.subr.mxu1 %v2524_v1 }
 0x601   : > { %2498 = vmatpush3.msra.mxu1 %v1678_v48 }
 0x602   : > { %2500 = vmatmul.mubr.msk.f32.vlgmr.msra.gmra.mxu1 %vm1859_vm0, %v1852_v57 }
 0x6c2   : > { %v1932_v59 = vpop.f32.mrf.mxu1 }
 0x6c3   : > { %v1933_v60 = vadd.f32 %v1932_v59, %v1857_v58 }
 0x6c4   : > { %v2501_v61 = vpop.f32.mrf.mxu1 }
 0x6c5   : > { %vm1936_vm1 = vcmp.ge.f32.partialorder %v1933_v60, 0.0  ;;  %v1937_v62 = vmul.f32 0.01, %v1933_v60 }
 0x6c7   : > { %v1938_v63 = vsel %vm1936_vm1, %v1933_v60, %v1937_v62 }
 0x6c8   : > { %1940 = vst.msk [vmem:[%s327_s24] sm:$0x1f] %vm1939_vm11, %v1938_v63 }
 0x6c9 PF: > { %s19_s30 = sadd.s32 1, %s2522_s30  }
 0x6ca   : > { %p16_p4 = scmp.ge.s32.totalorder %s19_s30, 4  }
 0x6cc   :  { %18 = sbr.rel (!%p16_p4) target bundleno = 1 (0x1), region = 86 }

</bundles_post_ra>
